<compile_context>
chip_gen: v5e
topology: v5e:2x2
jax: 0.10.0
libtpu: 0.0.40
codegen_flags: <defaults>
</compile_context>

<pallas_src>
import math

import jax
import jax.numpy as jnp
from jax.experimental import pallas as pl
from jax.experimental.pallas import tpu as pltpu


def _token_embedding_kernel(x_ref, w_ref, o_ref):
    # x_ref: (Bt, L, C)   w_ref: (3*C, D) tap-major rows   o_ref: (Bt, L, D)
    bt, seq_len, _ = x_ref.shape
    w = w_ref[...]                                    # resident weight, load once

    for b in range(bt):                               # static unroll over batch tile
        x = x_ref[b]                                  # (L, C)
        # circular shifts along the sequence (sublane) axis
        x_m1 = jnp.roll(x, 1, axis=0)                 # x[(t-1) % L]
        x_p1 = jnp.roll(x, -1, axis=0)                # x[(t+1) % L]
        # fuse the 3 conv taps into a single MXU matmul: (L, 3C) @ (3C, D)
        x_cat = jnp.concatenate([x_m1, x, x_p1], axis=-1)
        o_ref[b] = jnp.dot(
            x_cat, w, preferred_element_type=jnp.float32
        ).astype(o_ref.dtype)


def token_embedding(x, w, *, block_b=None,
                    vmem_limit_bytes=48 * 1024 * 1024):
    """x: (B, L, c_in), w: (3, c_in, d_model) tap-major -> (B, L, d_model)."""
    B, L, C = x.shape
    assert w.shape[0] == 3 and w.shape[1] == C
    D = w.shape[2]
    # Flatten weight once in the wrapper: rows = [tap(-1) chans | tap(0) | tap(+1)]
    w_flat = w.reshape(3 * C, D)

    if block_b is None:
        itemsize = jnp.dtype(x.dtype).itemsize
        # keep double-buffered input+output blocks well under VMEM on all gens
        budget = 16 * 1024 * 1024
        per_batch = 2 * L * (C + D) * itemsize
        block_b = max(1, min(B, budget // max(per_batch, 1)))
        block_b = min(block_b, 16)                    # bound in-kernel unrolling
        if B >= 2:                                    # >=2 grid steps for v7x (2 TCs)
            block_b = min(block_b, pl.cdiv(B, 2))
    grid = (pl.cdiv(B, block_b),)

    return pl.pallas_call(
        _token_embedding_kernel,
        out_shape=jax.ShapeDtypeStruct((B, L, D), x.dtype),
        grid=grid,
        in_specs=[
            pl.BlockSpec((block_b, L, C), lambda b: (b, 0, 0)),
            pl.BlockSpec((3 * C, D), lambda b: (0, 0)),   # resident, DMA'd once
        ],
        out_specs=pl.BlockSpec((block_b, L, D), lambda b: (b, 0, 0)),
        compiler_params=pltpu.CompilerParams(
            dimension_semantics=("parallel",),
            vmem_limit_bytes=vmem_limit_bytes,
        ),
    )(x, w_flat)


def _reference(x, w):
    # pure-JAX reference of the circular conv1d (channels-last), w: (3, C, D)
    x_m1 = jnp.roll(x, 1, axis=1)
    x_p1 = jnp.roll(x, -1, axis=1)
    return (jnp.einsum("blc,cd->bld", x_m1, w[0])
            + jnp.einsum("blc,cd->bld", x, w[1])
            + jnp.einsum("blc,cd->bld", x_p1, w[2]))


if __name__ == "__main__":
    B, L, C_IN, D_MODEL = 2, 8, 4, 32

    key = jax.random.PRNGKey(0)
    kx, kw = jax.random.split(key)

    x = jax.random.normal(kx, (B, L, C_IN), dtype=jnp.float32)

    # kaiming_normal_(mode='fan_in', nonlinearity='leaky_relu'):
    #   fan_in = c_in * kernel_size, gain = sqrt(2 / (1 + 0.01^2))
    fan_in = C_IN * 3
    gain = math.sqrt(2.0 / (1.0 + 0.01 ** 2))
    std = gain / math.sqrt(fan_in)
    # PyTorch weight is (d_model, c_in, 3); store tap-major (3, c_in, d_model).
    w_torch_layout = std * jax.random.normal(kw, (D_MODEL, C_IN, 3),
                                             dtype=jnp.float32)
    w = jnp.transpose(w_torch_layout, (2, 1, 0))  # (3, c_in, d_model)

    out = token_embedding(x, w)
    out = jax.block_until_ready(out)

    ref = _reference(x, w)
    assert out.shape == (B, L, D_MODEL)
    assert jnp.allclose(out, ref, atol=1e-5, rtol=1e-5)

    print("KERNEL_OK")
</pallas_src>

<mosaic_0001>
module attributes {stable_mosaic.version = 11 : i64} {
  func.func @_token_embedding_kernel(%arg0: i32, %arg1: memref<1x8x4xf32, #tpu.memory_space<vmem>>, %arg2: memref<12x32xf32, #tpu.memory_space<vmem>>, %arg3: memref<1x8x32xf32, #tpu.memory_space<vmem>>) attributes {dimension_semantics = [#tpu.dimension_semantics<parallel>], iteration_bounds = array<i64: 2>, scalar_prefetch = 0 : i64, scratch_operands = 0 : i64, tpu.core_type = #tpu.core_type<tc>, window_params = [{transform_indices = @transform_0, window_bounds = array<i64: 1, 8, 4>}, {pipeline_mode = #tpu.pipeline_mode<synchronous>, transform_indices = @transform_1, window_bounds = array<i64: 12, 32>}, {transform_indices = @transform_2, window_bounds = array<i64: 1, 8, 32>}]} {
    %c0 = arith.constant 0 : index
    %c0_0 = arith.constant 0 : index
    %0 = vector.load %arg2[%c0, %c0_0] : memref<12x32xf32, #tpu.memory_space<vmem>>, vector<12x32xf32>
    %c0_1 = arith.constant 0 : index
    %c0_2 = arith.constant 0 : index
    %c0_3 = arith.constant 0 : index
    %1 = vector.load %arg1[%c0_1, %c0_2, %c0_3] : memref<1x8x4xf32, #tpu.memory_space<vmem>>, vector<1x8x4xf32>
    %2 = vector.shape_cast %1 : vector<1x8x4xf32> to vector<8x4xf32>
    %3 = vector.extract_strided_slice %2 {offsets = [7, 0], sizes = [1, 4], strides = [1, 1]} : vector<8x4xf32> to vector<1x4xf32>
    %4 = vector.extract_strided_slice %2 {offsets = [0, 0], sizes = [7, 4], strides = [1, 1]} : vector<8x4xf32> to vector<7x4xf32>
    %5 = tpu.concatenate %3, %4 in 0 : vector<1x4xf32>, vector<7x4xf32> -> vector<8x4xf32>
    %6 = vector.extract_strided_slice %2 {offsets = [1, 0], sizes = [7, 4], strides = [1, 1]} : vector<8x4xf32> to vector<7x4xf32>
    %7 = vector.extract_strided_slice %2 {offsets = [0, 0], sizes = [1, 4], strides = [1, 1]} : vector<8x4xf32> to vector<1x4xf32>
    %8 = tpu.concatenate %6, %7 in 0 : vector<7x4xf32>, vector<1x4xf32> -> vector<8x4xf32>
    %9 = tpu.concatenate %5, %2, %8 in 1 : vector<8x4xf32>, vector<8x4xf32>, vector<8x4xf32> -> vector<8x12xf32>
    %cst = arith.constant dense<0.000000e+00> : vector<8x32xf32>
    %10 = tpu.matmul %9, %0, %cst {dimension_numbers = #tpu.dot_dimension_numbers<[1], [0], [0], [1], [0, 0, 1, 1], [], []>} : vector<8x12xf32>, vector<12x32xf32>, vector<8x32xf32> -> vector<8x32xf32>
    %c0_4 = arith.constant 0 : index
    %c0_5 = arith.constant 0 : index
    %c0_6 = arith.constant 0 : index
    %11 = vector.load %arg3[%c0_4, %c0_5, %c0_6] : memref<1x8x32xf32, #tpu.memory_space<vmem>>, vector<1x8x32xf32>
    %12 = vector.shape_cast %11 : vector<1x8x32xf32> to vector<8x32xf32>
    %13 = vector.shape_cast %10 : vector<8x32xf32> to vector<1x8x32xf32>
    tpu.vector_store %arg3[%c0_4, %c0_5, %c0_6], %13 {strides = array<i32>} : memref<1x8x32xf32, #tpu.memory_space<vmem>>, vector<1x8x32xf32>,
    return
  }
  func.func @transform_0(%arg0: i32) -> (i32, i32, i32) {
    %c0_i32 = arith.constant 0 : i32
    %c0_i32_0 = arith.constant 0 : i32
    %c0_i32_1 = arith.constant 0 : i32
    return %arg0, %c0_i32, %c0_i32_0 : i32, i32, i32
  }
  func.func @transform_1(%arg0: i32) -> (i32, i32) {
    %c0_i32 = arith.constant 0 : i32
    %c0_i32_0 = arith.constant 0 : i32
    %c0_i32_1 = arith.constant 0 : i32
    return %c0_i32, %c0_i32_0 : i32, i32
  }
  func.func @transform_2(%arg0: i32) -> (i32, i32, i32) {
    %c0_i32 = arith.constant 0 : i32
    %c0_i32_0 = arith.constant 0 : i32
    %c0_i32_1 = arith.constant 0 : i32
    return %arg0, %c0_i32, %c0_i32_0 : i32, i32, i32
  }
}

</mosaic_0001>

<bundles_post_ra>
// kernel: tpu_custom_call.1
= control target key start
LH: loop header
LB: loop body
LE: loop exit
PB: predicated region body
PF: predicated region fallthrough
CT: control target
= control target key end

     0   :  { %7 = vsyncpa [#allocation3], 0  ;;  %s492_s0 = inlined_call_operand.vmem [shape: f32[2,8,4], index: 0, kind: input, shape index: {}]   ;;  %s493_s1 = inlined_call_operand.vmem [shape: f32[12,32], index: 1, kind: input, shape index: {}]   ;;  %s494_s2 = inlined_call_operand.hbm [shape: f32[2,8,32], index: 2, kind: output, shape index: {}]  }
   0x1   :  { %9 = vsyncpa [#allocation3 + $0x1], 0  ;;  %s401_s9 = smov 0   ;;  %s403_s10 = smov 0  }
   0x2   :  { %s405_s11 = smov 0   ;;  %s407_s12 = smov 0  }
   0x3 LB: > { %s422_s13 = sadd.s32 4294967295, %s382_s12   ;;  %s267_s14 = sadd.s32 4294967294, %s382_s12   ;;  %s382_s12 = sphi %s407_s12, %s500_s12   ;;  %s378_s11 = sphi %s405_s11, %s499_s11   ;;  %s374_s10 = sphi %s403_s10, %s498_s10   ;;  %s370_s9 = sphi %s401_s9, %s497_s9  }
   0x4   : > { %s426_s15 = sadd.s32 1, %s382_s12   ;;  %s69_s16 = sadd.s32 1, %s378_s11 }
   0x5   : > { %s66_s17 = ssub.s32 %s382_s12, %s426_s15  ;;  %p79_p0 = scmp.ne.s32.totalorder %s378_s11, %s374_s10 }
   0x6   : > { %p67_p1 = scmp.eq.s32.totalorder %s66_s17, 0  ;;  %p80_p2 = scmp.eq.s32.totalorder %s422_s13, 1 }
   0x7   : > { %p85_p3 = scmp.ne.s32.totalorder %s374_s10, %s370_s9  ;;  %p86_p4 = scmp.eq.s32.totalorder %s267_s14, 1 }
   0x8   : > { %s437_s18 = scalar_select %p67_p1, %s378_s11, %s69_s16  }
   0x9   : > { %p439_p5 = por %p80_p2, %p79_p0  ;;  %p443_p6 = por %p86_p4, %p85_p3 }
   0xa   : > { %p270_p7 = scmp.ge.s32.totalorder %s382_s12, 1  ;;  %p114_p8 = scmp.lt.s32.totalorder %s382_s12, 3 }
   0xc   : > { %p115_p9 = pnand %p270_p7, %p114_p8 }
   0xd   : > { %p135_p10 = scmp.lt.s32.totalorder (!%p115_p9), %s422_s13, 1  ;;  %s384_s26 = smov (!%p115_p9), 4  }
   0xe   : > { %118 = sbr.rel (%p115_p9) target bundleno = 277 (0x115), region = 28  ;;  %s385_s27 = smov (!%p115_p9), 8  }
   0xf   : > { %s132_s4 = sand.u32 (!%p115_p9), 1, %s374_s10   ;;  %s276_s6 = sshll.u32 (!%p115_p9), %s422_s13, 3 }
  0x10   : > { %s271_s5 = sshll.u32 (!%p115_p9), %s132_s4, 3  ;;  %s203_s14 = scalar_lea.hbm (!%p115_p9), %s494_s2, %s276_s6 }
  0x11   : > { %s134_s16 = scalar_lea.vmem (!%p115_p9), [#allocation2], %s271_s5 }
  0x12   : > { %s205_s17 = sshll.u32 (!%p115_p9), %s134_s16, 4  ;;  %s206_s17 = int_to_ptr.vmem [resolvable:$true] %s205_s17 }
  0x13   : > { %s136_s21 = scalar_select %p135_p10, %s422_s13, 1  ;;  %v140_v2 = vld [vmem:[%s493_s1 + $0x8] sm:$0xf]  ;;  %vm166_vm0 = vcmask 1043456   ;;  %v139_v3 = vld [vmem:[%s493_s1] sm:$0xff]  ;;  %vm158_vm1 = vcmask 31744  }
  0x14   : > { %273 = vmatpush.msk.msra.mxu0 %vm166_vm0, %v140_v2  ;;  %vm160_vm2 = vcmask 64512   ;;  %vm162_vm3 = vcmask 97280   ;;  %vm190_vm4 = vcmask 261120  }
  0x15   : > { %s272_s22 = sshll.u32 %s136_s21, 3  ;;  %s207_s21 = sshll.u32 %s203_s14, 4  ;;  %s208_s21 = int_to_ptr.hbm [resolvable:$true] %s207_s21 }
  0x16   : > { %s138_s25 = scalar_lea.vmem %s492_s0, %s272_s22  ;;  %185 = vmatpush.msra.mxu0 %v139_v3  ;;  %s193_s22 = scalar_lea.sflag [#allocation3], %s132_s4 }
  0x17   : > { %v141_v0 = vld [vmem:[%s138_s25] sm:$0xff]  ;;  %s334_s23 = sshra.s32 %s208_s21, 4  ;;  %s335_s23 = int_to_ptr.hbm [resolvable:$true] %s334_s23 }
  0x18   : > { %151 = vrot.lane.b32.xlu0 %v141_v0, %s384_s26  ;;  %v147_v1 = vrot.slane %v141_v0, 1  ;;  %v143_v5 = vrot.slane %v141_v0, 7  ;;  %s336_s24 = scalar_lea.hbm %s335_s23, 8  ;;  %s340_s26 = scalar_lea.hbm %s494_s2, 16 }
  0x19   : > { %p337_p11 = scmp.ne.s32.totalorder %s335_s23, %s336_s24  ;;  %p341_p0 = scmp.lt.s32.totalorder %s335_s23, %s494_s2 }
  0x1a   : > { %p342_p1 = scmp.lt.s32.totalorder %s340_s26, %s336_s24 }
  0x1b   : > { %p338_p12 = pnand %p337_p11, %p439_p5 }
  0x1c   : > { %p343_p2 = por %p342_p1, %p341_p0 }
  0x1d   : > { %p339_p13 = pneg %p338_p12 }
  0x1f   : > { %p344_p3 = pnand %p343_p2, %p339_p13 }
  0x20   : > { %155 = vrot.lane.b32.xlu0 %v147_v1, %s385_s27 }
  0x8a   : > { %v152_v4 = vpop.permute.xlu0 %151 }
  0x8b   : > { %v159_v6 = vsel %vm158_vm1, %v143_v5, %v152_v4 }
  0x92   : > { %v156_v7 = vpop.permute.xlu0 %155 }
  0x93   : > { %v161_v8 = vsel %vm160_vm2, %v159_v6, %v156_v7 }
  0x94   : > { %274 = vmatmul.msk.f32.vlgmr.msra.gmra.mxu0 %vm162_vm3, %v161_v8 }
 0x111   : > { %v187_v9 = vpop.f32.mrf.mxu0 }
 0x112   : > { %191 = vst.msk [vmem:[%s134_s16] sm:$0xff] %vm190_vm4, %v187_v9 }
 0x113   : > { %347 = shalt.err (!%p344_p3)
}
 0x114   : > { %279 = dma.vmem_to_hbm [thread:$0]  (%p439_p5), %s206_s17, 128, %s208_s21, %s193_s22  }
 0x115 PF: > { %p285_p4 = scmp.ge.s32.totalorder %s382_s12, 2  ;;  %s219_s29 = sand.u32 1, %s370_s9  }
 0x116   : > { %s220_s30 = scalar_lea.sflag [#allocation3], %s219_s29 }
 0x117   : > { %p282_p7 = pnand %p285_p4, %p443_p6 }
 0x119   : > { %p283_p8 = pneg %p282_p7 }
 0x11b   : > { %365 = dma.done.wait (%p283_p8), %s220_s30, 128  }
 0x11c   : > { %367 = vsyncadd (%p283_p8), %s220_s30, 4294967168  ;;  %p12_p9 = scmp.ge.s32.totalorder %s426_s15, 4   ;;  %s497_s9 = smov %s374_s10 }
 0x11d   : > { %s498_s10 = smov %s378_s11  ;;  %s499_s11 = smov %s437_s18 }
 0x11e   : > { %s500_s12 = smov %s426_s15  ;;  %14 = sbr.rel (!%p12_p9) target bundleno = 3 (0x3), region = 63 }
 0x123   :  { %226 = vsyncpa [#allocation3], 1 }
 0x124   :  { %228 = vsyncpa [#allocation3 + $0x1], 1 }

</bundles_post_ra>
